<compile_context>
chip_gen: v5e
topology: v5e:2x2
jax: 0.10.0
libtpu: 0.0.40
codegen_flags: <defaults>
</compile_context>

<pallas_src>
import jax
import jax.numpy as jnp
from jax.experimental import pallas as pl
from jax.experimental.pallas import tpu as pltpu

N_STATE = 4      # e.g. CartPole observation dim
N_ACTIONS = 2    # e.g. CartPole action dim
HIDDEN = 50

H_PAD = 128      # hidden dim padded to one full lane tile
A_PAD = 8        # narrow lane-padded output (>= N_ACTIONS): 16x less HBM writeback
MAX_BM = 4096    # max rows per batch tile (VMEM-safe on v5e/v6e/v7x)
SMALL_B = 128    # at or below this, use a single tile (action-selection hot path)


def _round_up(n, m):
    return ((n + m - 1) // m) * m


def net_kernel(x_ref, w1_ref, b1_ref, w2_ref, b2_ref, o_ref):
    x = x_ref[...]                                    # (BM, N_STATE) f32
    w1 = w1_ref[...]                                  # (N_STATE, H_PAD) f32

    # fc1 as an unrolled VPU broadcast-FMA: K=4 is ~3% of the MXU contraction
    # width, so the VALU path is strictly faster and frees the MXU for fc2.
    h = b1_ref[...] + x[:, 0:1] * w1[0:1, :]          # (BM, H_PAD)
    for k in range(1, N_STATE):                       # static unroll
        h = h + x[:, k:k + 1] * w1[k:k + 1, :]
    h = jnp.maximum(h, 0.0)                           # ReLU; padded lanes stay 0

    # fc2 on the MXU: bf16 operands, f32 accumulate. Output is only A_PAD lanes
    # wide — same MXU cost (one 128-lane granule), far less HBM writeback.
    y = jnp.dot(h.astype(jnp.bfloat16), w2_ref[...],
                preferred_element_type=jnp.float32)   # (BM, A_PAD) f32
    o_ref[...] = (y + b2_ref[...]).astype(o_ref.dtype)


def pad_params(w1, b1, w2, b2):
    """Zero-pad (in, out)-layout params to lane-friendly shapes.

    w1: (N_STATE, HIDDEN) -> (N_STATE, H_PAD)  f32
    b1: (HIDDEN,)         -> (1, H_PAD)        f32
    w2: (HIDDEN, N_ACTIONS) -> (H_PAD, A_PAD)  bf16  (MXU-native)
    b2: (N_ACTIONS,)      -> (1, A_PAD)        f32
    """
    w1p = jnp.zeros((N_STATE, H_PAD), jnp.float32).at[:, :HIDDEN].set(
        jnp.asarray(w1, jnp.float32))
    b1p = jnp.zeros((1, H_PAD), jnp.float32).at[:, :HIDDEN].set(
        jnp.asarray(b1, jnp.float32).reshape(1, HIDDEN))
    w2p = jnp.zeros((H_PAD, A_PAD), jnp.bfloat16).at[:HIDDEN, :N_ACTIONS].set(
        jnp.asarray(w2, jnp.float32).astype(jnp.bfloat16))
    b2p = jnp.zeros((1, A_PAD), jnp.float32).at[:, :N_ACTIONS].set(
        jnp.asarray(b2, jnp.float32).reshape(1, N_ACTIONS))
    return w1p, b1p, w2p, b2p


@jax.jit
def net_forward(x, w1p, b1p, w2p, b2p):
    """x: (B, N_STATE) f32; params from pad_params. Returns (B, N_ACTIONS) f32."""
    B = x.shape[0]

    # Batch tile selection:
    #  * tiny action-selection batches -> one sublane-rounded tile;
    #  * larger (replay) batches -> at least 2 tiles so the "parallel" grid axis
    #    shards across v7x's 2 TensorCores, capped at MAX_BM, sized from
    #    ceil(B / n_tiles) to keep batch padding minimal.
    if B <= SMALL_B:
        bm = _round_up(max(B, 8), 8)
    else:
        n_tiles = max(2, -(-B // MAX_BM))
        bm = min(MAX_BM, _round_up(-(-B // n_tiles), 8))
    b_pad = _round_up(B, bm)
    if b_pad != B:
        x = jnp.pad(x, ((0, b_pad - B), (0, 0)))

    grid = (b_pad // bm,)

    # Advisory cost for XLA's scheduler (fc1 VPU + fc2 MXU; bytes = x + out + params).
    flops = 2 * b_pad * H_PAD * (N_STATE + A_PAD)
    bytes_accessed = (b_pad * N_STATE * 4 + b_pad * A_PAD * 4
                      + N_STATE * H_PAD * 4 + H_PAD * 4
                      + H_PAD * A_PAD * 2 + A_PAD * 4)

    out = pl.pallas_call(
        net_kernel,
        out_shape=jax.ShapeDtypeStruct((b_pad, A_PAD), jnp.float32),
        grid=grid,
        in_specs=[
            # batch-tiled activations
            pl.BlockSpec((bm, N_STATE), lambda i: (i, 0)),
            # weights/biases: full-array blocks, same index every step -> VMEM-resident
            pl.BlockSpec((N_STATE, H_PAD), lambda i: (0, 0)),
            pl.BlockSpec((1, H_PAD), lambda i: (0, 0)),
            pl.BlockSpec((H_PAD, A_PAD), lambda i: (0, 0)),
            pl.BlockSpec((1, A_PAD), lambda i: (0, 0)),
        ],
        out_specs=pl.BlockSpec((bm, A_PAD), lambda i: (i, 0)),
        compiler_params=pltpu.CompilerParams(
            dimension_semantics=("parallel",)),
        cost_estimate=pl.CostEstimate(
            flops=flops, transcendentals=0, bytes_accessed=bytes_accessed),
    )(x, w1p, b1p, w2p, b2p)

    # Drop batch padding and the zero-padded action lanes (fuses under jit).
    return out[:B, :N_ACTIONS]


def init_params(key):
    """Mirror the PyTorch module: weights ~ N(0, 0.1); biases ~ U(-1/sqrt(fan_in), +)."""
    k1, k2, k3, k4 = jax.random.split(key, 4)
    w1 = 0.1 * jax.random.normal(k1, (N_STATE, HIDDEN), dtype=jnp.float32)
    b1 = jax.random.uniform(k3, (HIDDEN,), jnp.float32,
                            -1.0 / jnp.sqrt(N_STATE), 1.0 / jnp.sqrt(N_STATE))
    w2 = 0.1 * jax.random.normal(k2, (HIDDEN, N_ACTIONS), dtype=jnp.float32)
    b2 = jax.random.uniform(k4, (N_ACTIONS,), jnp.float32,
                            -1.0 / jnp.sqrt(HIDDEN), 1.0 / jnp.sqrt(HIDDEN))
    return w1, b1, w2, b2


def reference(x, w1, b1, w2, b2):
    return jnp.maximum(x @ w1 + b1, 0.0) @ w2 + b2


if __name__ == "__main__":
    key = jax.random.PRNGKey(0)
    pkey, xkey, xkey2 = jax.random.split(key, 3)
    w1, b1, w2, b2 = init_params(pkey)
    w1p, b1p, w2p, b2p = pad_params(w1, b1, w2, b2)

    # Tolerances are loosened vs. the pure-f32 reference because fc2 weights
    # are bf16 on the MXU (DQN q-values easily tolerate this).
    ATOL, RTOL = 2e-2, 2e-2

    # Primary check: tiny action-selection batch (single 8-row tile).
    B = 2
    x = jax.random.normal(xkey, (B, N_STATE), dtype=jnp.float32)
    out = net_forward(x, w1p, b1p, w2p, b2p)
    jax.block_until_ready(out)
    ref = reference(x, w1, b1, w2, b2)
    assert out.shape == (B, N_ACTIONS)
    assert jnp.allclose(out, ref, atol=ATOL, rtol=RTOL), "mismatch vs reference (B=2)"

    # Secondary check: replay-buffer-sized batch exercising the multi-tile grid
    # (B=600 -> two 304-row tiles, zero-padded tail rows sliced off).
    B2 = 600
    x2 = jax.random.normal(xkey2, (B2, N_STATE), dtype=jnp.float32)
    out2 = net_forward(x2, w1p, b1p, w2p, b2p)
    jax.block_until_ready(out2)
    ref2 = reference(x2, w1, b1, w2, b2)
    assert out2.shape == (B2, N_ACTIONS)
    assert jnp.allclose(out2, ref2, atol=ATOL, rtol=RTOL), "mismatch vs reference (B=600)"

    print("KERNEL_OK")
</pallas_src>

<mosaic_0001>
module attributes {stable_mosaic.version = 11 : i64} {
  func.func @net_kernel(%arg0: i32, %arg1: memref<8x4xf32, #tpu.memory_space<vmem>>, %arg2: memref<4x128xf32, #tpu.memory_space<vmem>>, %arg3: memref<1x128xf32, #tpu.memory_space<vmem>>, %arg4: memref<128x8xbf16, #tpu.memory_space<vmem>>, %arg5: memref<1x8xf32, #tpu.memory_space<vmem>>, %arg6: memref<8x8xf32, #tpu.memory_space<vmem>>) attributes {dimension_semantics = [#tpu.dimension_semantics<parallel>], iteration_bounds = array<i64: 1>, scalar_prefetch = 0 : i64, scratch_operands = 0 : i64, tpu.core_type = #tpu.core_type<tc>, window_params = [{transform_indices = @transform_0, window_bounds = array<i64: 8, 4>}, {pipeline_mode = #tpu.pipeline_mode<synchronous>, transform_indices = @transform_1, window_bounds = array<i64: 4, 128>}, {pipeline_mode = #tpu.pipeline_mode<synchronous>, transform_indices = @transform_2, window_bounds = array<i64: 1, 128>}, {pipeline_mode = #tpu.pipeline_mode<synchronous>, transform_indices = @transform_3, window_bounds = array<i64: 128, 8>}, {pipeline_mode = #tpu.pipeline_mode<synchronous>, transform_indices = @transform_4, window_bounds = array<i64: 1, 8>}, {transform_indices = @transform_5, window_bounds = array<i64: 8, 8>}]} {
    %c0 = arith.constant 0 : index
    %c0_0 = arith.constant 0 : index
    %0 = vector.load %arg1[%c0, %c0_0] : memref<8x4xf32, #tpu.memory_space<vmem>>, vector<8x4xf32>
    %c0_1 = arith.constant 0 : index
    %c0_2 = arith.constant 0 : index
    %1 = vector.load %arg2[%c0_1, %c0_2] : memref<4x128xf32, #tpu.memory_space<vmem>>, vector<4x128xf32>
    %c0_3 = arith.constant 0 : index
    %c0_4 = arith.constant 0 : index
    %2 = vector.load %arg3[%c0_3, %c0_4] : memref<1x128xf32, #tpu.memory_space<vmem>>, vector<1x128xf32>
    %3 = vector.extract_strided_slice %0 {offsets = [0, 0], sizes = [8, 1], strides = [1, 1]} : vector<8x4xf32> to vector<8x1xf32>
    %4 = vector.extract_strided_slice %1 {offsets = [0, 0], sizes = [1, 128], strides = [1, 1]} : vector<4x128xf32> to vector<1x128xf32>
    %5 = vector.broadcast %3 : vector<8x1xf32> to vector<8x128xf32>
    %6 = vector.broadcast %4 : vector<1x128xf32> to vector<8x128xf32>
    %7 = arith.mulf %5, %6 : vector<8x128xf32>
    %8 = vector.broadcast %2 : vector<1x128xf32> to vector<8x128xf32>
    %9 = arith.addf %8, %7 : vector<8x128xf32>
    %10 = vector.extract_strided_slice %0 {offsets = [0, 1], sizes = [8, 1], strides = [1, 1]} : vector<8x4xf32> to vector<8x1xf32>
    %11 = vector.extract_strided_slice %1 {offsets = [1, 0], sizes = [1, 128], strides = [1, 1]} : vector<4x128xf32> to vector<1x128xf32>
    %12 = vector.broadcast %10 : vector<8x1xf32> to vector<8x128xf32>
    %13 = vector.broadcast %11 : vector<1x128xf32> to vector<8x128xf32>
    %14 = arith.mulf %12, %13 : vector<8x128xf32>
    %15 = arith.addf %9, %14 : vector<8x128xf32>
    %16 = vector.extract_strided_slice %0 {offsets = [0, 2], sizes = [8, 1], strides = [1, 1]} : vector<8x4xf32> to vector<8x1xf32>
    %17 = vector.extract_strided_slice %1 {offsets = [2, 0], sizes = [1, 128], strides = [1, 1]} : vector<4x128xf32> to vector<1x128xf32>
    %18 = vector.broadcast %16 : vector<8x1xf32> to vector<8x128xf32>
    %19 = vector.broadcast %17 : vector<1x128xf32> to vector<8x128xf32>
    %20 = arith.mulf %18, %19 : vector<8x128xf32>
    %21 = arith.addf %15, %20 : vector<8x128xf32>
    %22 = vector.extract_strided_slice %0 {offsets = [0, 3], sizes = [8, 1], strides = [1, 1]} : vector<8x4xf32> to vector<8x1xf32>
    %23 = vector.extract_strided_slice %1 {offsets = [3, 0], sizes = [1, 128], strides = [1, 1]} : vector<4x128xf32> to vector<1x128xf32>
    %24 = vector.broadcast %22 : vector<8x1xf32> to vector<8x128xf32>
    %25 = vector.broadcast %23 : vector<1x128xf32> to vector<8x128xf32>
    %26 = arith.mulf %24, %25 : vector<8x128xf32>
    %27 = arith.addf %21, %26 : vector<8x128xf32>
    %cst = arith.constant 0.000000e+00 : f32
    %28 = vector.broadcast %cst : f32 to vector<8x128xf32>
    %29 = arith.maximumf %27, %28 : vector<8x128xf32>
    %30 = arith.truncf %29 : vector<8x128xf32> to vector<8x128xbf16>
    %c0_5 = arith.constant 0 : index
    %c0_6 = arith.constant 0 : index
    %31 = vector.load %arg4[%c0_5, %c0_6] : memref<128x8xbf16, #tpu.memory_space<vmem>>, vector<128x8xbf16>
    %cst_7 = arith.constant dense<0.000000e+00> : vector<8x8xf32>
    %32 = tpu.matmul %30, %31, %cst_7 {dimension_numbers = #tpu.dot_dimension_numbers<[1], [0], [0], [1], [0, 0, 1, 1], [], []>} : vector<8x128xbf16>, vector<128x8xbf16>, vector<8x8xf32> -> vector<8x8xf32>
    %c0_8 = arith.constant 0 : index
    %c0_9 = arith.constant 0 : index
    %33 = vector.load %arg5[%c0_8, %c0_9] : memref<1x8xf32, #tpu.memory_space<vmem>>, vector<1x8xf32>
    %34 = vector.broadcast %33 : vector<1x8xf32> to vector<8x8xf32>
    %35 = arith.addf %32, %34 : vector<8x8xf32>
    %c0_10 = arith.constant 0 : index
    %c0_11 = arith.constant 0 : index
    %36 = vector.load %arg6[%c0_10, %c0_11] : memref<8x8xf32, #tpu.memory_space<vmem>>, vector<8x8xf32>
    tpu.vector_store %arg6[%c0_10, %c0_11], %35 {strides = array<i32>} : memref<8x8xf32, #tpu.memory_space<vmem>>, vector<8x8xf32>,
    return
  }
  func.func @transform_0(%arg0: i32) -> (i32, i32) {
    %c0_i32 = arith.constant 0 : i32
    %c0_i32_0 = arith.constant 0 : i32
    return %arg0, %c0_i32 : i32, i32
  }
  func.func @transform_1(%arg0: i32) -> (i32, i32) {
    %c0_i32 = arith.constant 0 : i32
    %c0_i32_0 = arith.constant 0 : i32
    %c0_i32_1 = arith.constant 0 : i32
    return %c0_i32, %c0_i32_0 : i32, i32
  }
  func.func @transform_2(%arg0: i32) -> (i32, i32) {
    %c0_i32 = arith.constant 0 : i32
    %c0_i32_0 = arith.constant 0 : i32
    %c0_i32_1 = arith.constant 0 : i32
    return %c0_i32, %c0_i32_0 : i32, i32
  }
  func.func @transform_3(%arg0: i32) -> (i32, i32) {
    %c0_i32 = arith.constant 0 : i32
    %c0_i32_0 = arith.constant 0 : i32
    %c0_i32_1 = arith.constant 0 : i32
    return %c0_i32, %c0_i32_0 : i32, i32
  }
  func.func @transform_4(%arg0: i32) -> (i32, i32) {
    %c0_i32 = arith.constant 0 : i32
    %c0_i32_0 = arith.constant 0 : i32
    %c0_i32_1 = arith.constant 0 : i32
    return %c0_i32, %c0_i32_0 : i32, i32
  }
  func.func @transform_5(%arg0: i32) -> (i32, i32) {
    %c0_i32 = arith.constant 0 : i32
    %c0_i32_0 = arith.constant 0 : i32
    return %arg0, %c0_i32 : i32, i32
  }
}

</mosaic_0001>

<bundles_post_ra>
// kernel: net_forward.1
= control target key start
LH: loop header
LB: loop body
LE: loop exit
PB: predicated region body
PF: predicated region fallthrough
CT: control target
= control target key end

     0   :  { %v195_v0 = vmov 0   ;;  %v196_v2 = vmov 2   ;;  %v197_v6 = vmov 1   ;;  %v198_v7 = vmov 3   ;;  %s268_s0 = inlined_call_operand.vmem [shape: f32[8,4], index: 0, kind: input, shape index: {}]   ;;  %s269_s3 = inlined_call_operand.vmem [shape: bf16[128,8], index: 3, kind: input, shape index: {}]   ;;  %s270_s2 = inlined_call_operand.vmem [shape: f32[1,128], index: 2, kind: input, shape index: {}]   ;;  %s271_s4 = inlined_call_operand.vmem [shape: f32[1,8], index: 4, kind: input, shape index: {}]   ;;  %s272_s1 = inlined_call_operand.vmem [shape: f32[4,128], index: 1, kind: input, shape index: {}]   ;;  %s273_s5 = inlined_call_operand.vmem [shape: f32[8,8], index: 5, kind: output, shape index: {}]  }
   0x1   :  { %188 = vset.pattern.permute.xlu0 %v195_v0  ;;  %v20_v1 = vld [vmem:[%s268_s0] sm:$0xff]  ;;  %190 = vset.pattern.permute.xlu1 %v196_v2  ;;  %v183_v3 = vld [vmem:[%s269_s3 + $0x38] sm:$0xff]  ;;  %v182_v4 = vld [vmem:[%s269_s3 + $0x30] sm:$0xff]  ;;  %vm138_vm0 = vcmask 64512  }
   0x2   :  { %25 = vperm.xlu0 %188, %v20_v1   ;;  %42 = vperm.xlu1 %190, %v20_v1   ;;  %v181_v5 = vld [vmem:[%s269_s3 + $0x28] sm:$0xff]  ;;  %v180_v8 = vld [vmem:[%s269_s3 + $0x20] sm:$0xff]  ;;  %v179_v9 = vld [vmem:[%s269_s3 + $0x18] sm:$0xff] }
   0x3   :  { %125 = vmatpush.bf16.msra.mxu0 %v183_v3  ;;  %v178_v10 = vld [vmem:[%s269_s3 + $0x10] sm:$0xff]  ;;  %v177_v11 = vld [vmem:[%s269_s3 + $0x8] sm:$0xff]  ;;  %v176_v12 = vld [vmem:[%s269_s3] sm:$0xff] }
   0x4   :  { %v21_v13 = vld [vmem:[%s272_s1] sm:$0xf] }
   0x5   :  { %v28_v16 = vperm.slane %v21_v13, 0  ;;  %v193_v17 = vld [vmem:[%s270_s2] ss:$0 sm:$0xff]  ;;  %v38_v19 = vperm.slane %v21_v13, 1  ;;  %v45_v20 = vperm.slane %v21_v13, 2  ;;  %v52_v21 = vperm.slane %v21_v13, 3 }
   0x6   :  { %v194_v33 = vld [vmem:[%s271_s4] ss:$0 sm:$0xff] }
   0x7   :  { %126 = vmatpush.bf16.msra.mxu0 %v182_v4 }
   0xa   :  { %189 = vset.pattern.permute.xlu0 %v197_v6  ;;  %191 = vset.pattern.permute.xlu1 %v198_v7 }
   0xb   :  { %35 = vperm.xlu0 %189, %v20_v1   ;;  %49 = vperm.xlu1 %191, %v20_v1  }
   0xc   :  { %127 = vmatpush.bf16.msra.mxu0 %v181_v5 }
  0x10   :  { %128 = vmatpush.bf16.msra.mxu0 %v180_v8 }
  0x13   :  { %192 = vset.pattern.permute.xlu0 %v198_v7 }
  0x14   :  { %129 = vmatpush.bf16.msra.mxu0 %v179_v9 }
  0x18   :  { %130 = vmatpush.bf16.msra.mxu0 %v178_v10 }
  0x1c   :  { %131 = vmatpush.bf16.msra.mxu0 %v177_v11 }
  0x20   :  { %132 = vmatpush.bf16.msra.mxu0 %v176_v12 }
  0x74   :  { %v26_v14 = vpop.permute.xlu0 %25  ;;  %v43_v15 = vpop.permute.xlu1 %42 }
  0x75   :  { %v29_v18 = vmul.f32 %v28_v16, %v26_v14  ;;  %v46_v26 = vmul.f32 %v45_v20, %v43_v15 }
  0x77   :  { %v33_v24 = vadd.f32 %v193_v17, %v29_v18 }
  0x7d   :  { %v36_v22 = vpop.permute.xlu0 %35  ;;  %v50_v23 = vpop.permute.xlu1 %49 }
  0x7e   :  { %v39_v25 = vmul.f32 %v38_v19, %v36_v22  ;;  %v53_v28 = vmul.f32 %v52_v21, %v50_v23 }
  0x80   :  { %v40_v27 = vadd.f32 %v39_v25, %v33_v24 }
  0x82   :  { %v47_v29 = vadd.f32 %v46_v26, %v40_v27 }
  0x84   :  { %v54_v30 = vadd.f32 %v53_v28, %v47_v29 }
  0x86   :  { %v55_v31 = vmax.f32 %v54_v30, 0.0 }
  0x88   :  { %v56_v32 = vpack.c.bf16 %v55_v31, %v55_v31 }
  0x8a   :  { %133 = vmatmul.bf16.vlgmr.msra.gmra.mxu0 %v56_v32 }
 0x107   :  { %v134_v34 = vpop.f32.mrf.mxu0 }
 0x108   :  { %v135_v35 = vadd.f32 %v194_v33, %v134_v34 }
 0x10a   :  { %139 = vst.msk [vmem:[%s273_s5] sm:$0xff] %vm138_vm0, %v135_v35 }
 0x10f   :  { %v136_v36 = vpop.f32.mrf.mxu0 }

</bundles_post_ra>
